<compile_context>
chip_gen: v7x
topology: tpu7x:2x2x1
jax: 0.10.0
libtpu: 0.0.40
codegen_flags: <defaults>
</compile_context>

<pallas_src>
import functools

import jax
import jax.numpy as jnp
from jax.experimental import pallas as pl
from jax.experimental.pallas import tpu as pltpu


def _stat_pool_kernel(x_ref, mean_ref, std_ref, sum_ref, sumsq_ref, *, t_total):
    """Grid = (batch blocks, T chunks). Accumulate sum/sumsq over T, finalize last."""
    k = pl.program_id(1)

    @pl.when(k == 0)
    def _init():
        sum_ref[...] = jnp.zeros_like(sum_ref)
        sumsq_ref[...] = jnp.zeros_like(sumsq_ref)

    # (TB, C, TT) chunk; cast per-chunk so bf16 inputs never materialize a full
    # f32 copy of the tile beyond this chunk.
    x = x_ref[...].astype(jnp.float32)
    sum_ref[...] += jnp.sum(x, axis=-1)          # (TB, C)
    sumsq_ref[...] += jnp.sum(x * x, axis=-1)    # (TB, C)

    @pl.when(k == pl.num_programs(1) - 1)
    def _finalize():
        s = sum_ref[...]
        mean = s * (1.0 / jnp.float32(t_total))
        # Unbiased (ddof=1) variance; divisor uses the FULL T, not the chunk size.
        var = (sumsq_ref[...] - s * mean) / jnp.float32(t_total - 1)
        var = jnp.maximum(var, 0.0)              # clamp fp rounding
        mean_ref[...] = mean.astype(mean_ref.dtype)
        std_ref[...] = jnp.sqrt(var).astype(std_ref.dtype)


def _auto_tiles(B, C, T, itemsize, target_bytes=4 << 20):
    """Pick (TB, TT) so the input tile is ~<=4 MiB (double-buffered -> <=8 MiB)."""
    # Time tile: largest divisor of T that is a multiple of 128 and keeps a single
    # batch-row slab under budget; fall back to full T if T isn't 128-aligned.
    if T % 128 == 0:
        cap = max(128, target_bytes // max(1, C * itemsize))
        tt = 128
        for d in range(128, T + 1, 128):
            if T % d == 0 and d <= cap:
                tt = d
    else:
        tt = T
    # Batch tile: divisor of B that is a multiple of 8 (keeps the (TB, C) output
    # block sublane-aligned); prefer >=2 grid steps so v7x can use both TCs.
    cands = [d for d in range(8, B + 1, 8) if B % d == 0]
    if not cands:
        tb = B
    else:
        fitting = [d for d in cands if d * C * tt * itemsize <= target_bytes]
        fitting = fitting or [cands[0]]
        multi = [d for d in fitting if B // d >= 2]
        tb = max(multi) if multi else max(fitting)
    return tb, tt


def statistical_pooling(x, *, block_b=None, block_t=None):
    """x: (B, C, T) -> (B, 2C) = concat(mean over T, unbiased std over T)."""
    B, C, T = x.shape
    itemsize = jnp.dtype(x.dtype).itemsize
    tb_auto, tt_auto = _auto_tiles(B, C, T, itemsize)
    tb = tb_auto if block_b is None else block_b
    tt = tt_auto if block_t is None else block_t
    assert B % tb == 0, (B, tb)
    assert T % tt == 0, (T, tt)

    kernel = functools.partial(_stat_pool_kernel, t_total=T)
    mean, std = pl.pallas_call(
        kernel,
        out_shape=(
            jax.ShapeDtypeStruct((B, C), x.dtype),
            jax.ShapeDtypeStruct((B, C), x.dtype),
        ),
        grid_spec=pltpu.PrefetchScalarGridSpec(
            num_scalar_prefetch=0,
            grid=(B // tb, T // tt),                       # reduction axis last
            in_specs=[pl.BlockSpec((tb, C, tt), lambda b, k: (b, 0, k))],
            out_specs=[
                pl.BlockSpec((tb, C), lambda b, k: (b, 0)),
                pl.BlockSpec((tb, C), lambda b, k: (b, 0)),
            ],
            scratch_shapes=[
                pltpu.VMEM((tb, C), jnp.float32),          # running sum
                pltpu.VMEM((tb, C), jnp.float32),          # running sum of squares
            ],
        ),
        compiler_params=pltpu.CompilerParams(
            dimension_semantics=("parallel", "arbitrary"),
        ),
    )(x)
    # Concatenate in the wrapper (plain XLA op on a tiny array) instead of an
    # in-kernel XLU concat + (1, 2C) temporary per grid step.
    return jnp.concatenate([mean, std], axis=-1)


if __name__ == "__main__":
    key = jax.random.PRNGKey(0)
    B, C, T = 16, 16, 256  # small (batch, channels, frames) test shape
    x = jax.random.normal(key, (B, C, T), dtype=jnp.float32)

    # Force both grid axes at this small shape: 2 batch blocks x 2 T chunks,
    # exercising the sum/sumsq accumulation + finalize path.
    out = jax.block_until_ready(statistical_pooling(x, block_b=8, block_t=128))

    # Pure-JAX reference with torch.std semantics (unbiased, ddof=1).
    ref = jnp.concatenate(
        [jnp.mean(x, axis=-1), jnp.std(x, axis=-1, ddof=1)], axis=-1
    )

    assert out.shape == (B, 2 * C), out.shape
    assert jnp.allclose(out, ref, atol=1e-4, rtol=1e-4), (
        float(jnp.max(jnp.abs(out - ref)))
    )

    # Auto-tiled path.
    out2 = jax.block_until_ready(statistical_pooling(x))
    assert jnp.allclose(out2, ref, atol=1e-4, rtol=1e-4), (
        float(jnp.max(jnp.abs(out2 - ref)))
    )

    print("KERNEL_OK")
</pallas_src>

<mosaic_0001>
module attributes {stable_mosaic.version = 11 : i64} {
  func.func @_stat_pool_kernel(%arg0: i32, %arg1: i32, %arg2: memref<8x16x128xf32, #tpu.memory_space<vmem>>, %arg3: memref<8x16xf32, #tpu.memory_space<vmem>>, %arg4: memref<8x16xf32, #tpu.memory_space<vmem>>, %arg5: memref<8x16xf32, #tpu.memory_space<vmem>>, %arg6: memref<8x16xf32, #tpu.memory_space<vmem>>) attributes {dimension_semantics = [#tpu.dimension_semantics<parallel>, #tpu.dimension_semantics<arbitrary>], iteration_bounds = array<i64: 2, 2>, scalar_prefetch = 0 : i64, scratch_operands = 2 : i64, tpu.core_type = #tpu.core_type<tc>, window_params = [{transform_indices = @transform_0, window_bounds = array<i64: 8, 16, 128>}, {transform_indices = @transform_1, window_bounds = array<i64: 8, 16>}, {transform_indices = @transform_2, window_bounds = array<i64: 8, 16>}]} {
    %c0_i32 = arith.constant 0 : i32
    %0 = arith.cmpi eq, %arg1, %c0_i32 : i32
    %1 = arith.extui %0 : i1 to i32
    %c0_i32_0 = arith.constant 0 : i32
    %2 = arith.cmpi ne, %1, %c0_i32_0 : i32
    scf.if %2 {
      %cst_13 = arith.constant 0.000000e+00 : f32
      %16 = vector.broadcast %cst_13 : f32 to vector<8x16xf32>
      %c0_14 = arith.constant 0 : index
      %c0_15 = arith.constant 0 : index
      %17 = vector.load %arg5[%c0_14, %c0_15] : memref<8x16xf32, #tpu.memory_space<vmem>>, vector<8x16xf32>
      tpu.vector_store %arg5[%c0_14, %c0_15], %16 {strides = array<i32>} : memref<8x16xf32, #tpu.memory_space<vmem>>, vector<8x16xf32>,
      %cst_16 = arith.constant 0.000000e+00 : f32
      %18 = vector.broadcast %cst_16 : f32 to vector<8x16xf32>
      %c0_17 = arith.constant 0 : index
      %c0_18 = arith.constant 0 : index
      %19 = vector.load %arg6[%c0_17, %c0_18] : memref<8x16xf32, #tpu.memory_space<vmem>>, vector<8x16xf32>
      tpu.vector_store %arg6[%c0_17, %c0_18], %18 {strides = array<i32>} : memref<8x16xf32, #tpu.memory_space<vmem>>, vector<8x16xf32>,
    } else {
    }
    %c0 = arith.constant 0 : index
    %c0_1 = arith.constant 0 : index
    %c0_2 = arith.constant 0 : index
    %3 = vector.load %arg2[%c0, %c0_1, %c0_2] : memref<8x16x128xf32, #tpu.memory_space<vmem>>, vector<8x16x128xf32>
    %c0_3 = arith.constant 0 : index
    %c0_4 = arith.constant 0 : index
    %4 = vector.load %arg5[%c0_3, %c0_4] : memref<8x16xf32, #tpu.memory_space<vmem>>, vector<8x16xf32>
    %cst = arith.constant dense<0.000000e+00> : vector<8x16xf32>
    %5 = vector.multi_reduction <add>, %3, %cst [2] : vector<8x16x128xf32> to vector<8x16xf32>
    %6 = arith.addf %4, %5 : vector<8x16xf32>
    %c0_5 = arith.constant 0 : index
    %c0_6 = arith.constant 0 : index
    %7 = vector.load %arg5[%c0_5, %c0_6] : memref<8x16xf32, #tpu.memory_space<vmem>>, vector<8x16xf32>
    tpu.vector_store %arg5[%c0_5, %c0_6], %6 {strides = array<i32>} : memref<8x16xf32, #tpu.memory_space<vmem>>, vector<8x16xf32>,
    %c0_7 = arith.constant 0 : index
    %c0_8 = arith.constant 0 : index
    %8 = vector.load %arg6[%c0_7, %c0_8] : memref<8x16xf32, #tpu.memory_space<vmem>>, vector<8x16xf32>
    %9 = arith.mulf %3, %3 : vector<8x16x128xf32>
    %cst_9 = arith.constant dense<0.000000e+00> : vector<8x16xf32>
    %10 = vector.multi_reduction <add>, %9, %cst_9 [2] : vector<8x16x128xf32> to vector<8x16xf32>
    %11 = arith.addf %8, %10 : vector<8x16xf32>
    %c0_10 = arith.constant 0 : index
    %c0_11 = arith.constant 0 : index
    %12 = vector.load %arg6[%c0_10, %c0_11] : memref<8x16xf32, #tpu.memory_space<vmem>>, vector<8x16xf32>
    tpu.vector_store %arg6[%c0_10, %c0_11], %11 {strides = array<i32>} : memref<8x16xf32, #tpu.memory_space<vmem>>, vector<8x16xf32>,
    %c1_i32 = arith.constant 1 : i32
    %13 = arith.cmpi eq, %arg1, %c1_i32 : i32
    %14 = arith.extui %13 : i1 to i32
    %c0_i32_12 = arith.constant 0 : i32
    %15 = arith.cmpi ne, %14, %c0_i32_12 : i32
    scf.if %15 {
      %c0_13 = arith.constant 0 : index
      %c0_14 = arith.constant 0 : index
      %16 = vector.load %arg5[%c0_13, %c0_14] : memref<8x16xf32, #tpu.memory_space<vmem>>, vector<8x16xf32>
      %cst_15 = arith.constant 1.000000e+00 : f32
      %cst_16 = arith.constant 2.560000e+02 : f32
      %17 = arith.divf %cst_15, %cst_16 : f32
      %18 = vector.broadcast %17 : f32 to vector<8x16xf32>
      %19 = arith.mulf %16, %18 : vector<8x16xf32>
      %c0_17 = arith.constant 0 : index
      %c0_18 = arith.constant 0 : index
      %20 = vector.load %arg6[%c0_17, %c0_18] : memref<8x16xf32, #tpu.memory_space<vmem>>, vector<8x16xf32>
      %21 = arith.mulf %16, %19 : vector<8x16xf32>
      %22 = arith.subf %20, %21 : vector<8x16xf32>
      %cst_19 = arith.constant 2.550000e+02 : f32
      %23 = vector.broadcast %cst_19 : f32 to vector<8x16xf32>
      %24 = arith.divf %22, %23 : vector<8x16xf32>
      %cst_20 = arith.constant 0.000000e+00 : f32
      %25 = vector.broadcast %cst_20 : f32 to vector<8x16xf32>
      %26 = arith.maximumf %24, %25 : vector<8x16xf32>
      %c0_21 = arith.constant 0 : index
      %c0_22 = arith.constant 0 : index
      %27 = vector.load %arg3[%c0_21, %c0_22] : memref<8x16xf32, #tpu.memory_space<vmem>>, vector<8x16xf32>
      tpu.vector_store %arg3[%c0_21, %c0_22], %19 {strides = array<i32>} : memref<8x16xf32, #tpu.memory_space<vmem>>, vector<8x16xf32>,
      %28 = math.sqrt %26 : vector<8x16xf32>
      %c0_23 = arith.constant 0 : index
      %c0_24 = arith.constant 0 : index
      %29 = vector.load %arg4[%c0_23, %c0_24] : memref<8x16xf32, #tpu.memory_space<vmem>>, vector<8x16xf32>
      tpu.vector_store %arg4[%c0_23, %c0_24], %28 {strides = array<i32>} : memref<8x16xf32, #tpu.memory_space<vmem>>, vector<8x16xf32>,
    } else {
    }
    return
  }
  func.func @transform_0(%arg0: i32, %arg1: i32) -> (i32, i32, i32) {
    %c0_i32 = arith.constant 0 : i32
    %c0_i32_0 = arith.constant 0 : i32
    return %arg0, %c0_i32, %arg1 : i32, i32, i32
  }
  func.func @transform_1(%arg0: i32, %arg1: i32) -> (i32, i32) {
    %c0_i32 = arith.constant 0 : i32
    %c0_i32_0 = arith.constant 0 : i32
    return %arg0, %c0_i32 : i32, i32
  }
  func.func @transform_2(%arg0: i32, %arg1: i32) -> (i32, i32) {
    %c0_i32 = arith.constant 0 : i32
    %c0_i32_0 = arith.constant 0 : i32
    return %arg0, %c0_i32 : i32, i32
  }
}

</mosaic_0001>

<bundles_post_ra>
// kernel: tpu_custom_call.1
= control target key start
LH: loop header
LB: loop body
LE: loop exit
PB: predicated region body
PF: predicated region fallthrough
CT: control target
= control target key end

     0   :  { %s1380_s0 = inlined_call_operand.hbm [shape: f32[16,16,256], index: 0, kind: input, shape index: {}]   ;;  %s1381_s1 = inlined_call_operand.hbm [shape: f32[16,16], index: 1, kind: output, shape index: {0}]   ;;  %s1382_s2 = inlined_call_operand.hbm [shape: f32[16,16], index: 2, kind: output, shape index: {1}]  }
   0x1   :  { %1385 = sst [smem:[#allocation14_spill]] %s1380_s0 }
   0x2   :  { %8 = vsyncpa [#allocation5], 0 }
   0x3   :  { %10 = vsyncpa [#allocation5 + $0x1], 0 }
   0x4   :  { %11 = vsyncpa [#allocation6], 0 }
   0x5   :  { %13 = vsyncpa [#allocation6 + $0x1], 0 }
   0x6   :  { %14 = vsyncpa [#allocation9], 0 }
   0x7   :  { %16 = vsyncpa [#allocation9 + $0x1], 0  ;;  %s1013_s9 = smov 0   ;;  %s1015_s10 = smov 0  }
   0x8   :  { %s1017_s11 = smov 0   ;;  %s1019_s12 = smov 0  }
   0x9   :  { %s1021_s13 = smov 0   ;;  %s1023_s14 = smov 0  }
   0xa   :  { %s1025_s15 = smov 0   ;;  %s1027_s16 = smov 0  }
   0xb   :  { %s1029_s17 = smov 0   ;;  %s1031_s18 = smov 0  }
   0xc   :  { %s1033_s19 = smov 0  }
   0xd LB: > { %s671_s20 = sadd.s32 4294967295, %s989_s19   ;;  %s672_s21 = sadd.s32 4294967294, %s989_s19   ;;  %s989_s19 = sphi %s1033_s19, %s22_s19   ;;  %s985_s18 = sphi %s1031_s18, %s1405_s18   ;;  %s981_s17 = sphi %s1029_s17, %s1404_s17   ;;  %s977_s16 = sphi %s1027_s16, %s1403_s16   ;;  %s973_s15 = sphi %s1025_s15, %s1402_s15   ;;  %s969_s14 = sphi %s1023_s14, %s1401_s14   ;;  %s965_s13 = sphi %s1021_s13, %s1400_s13   ;;  %s961_s12 = sphi %s1019_s12, %s1399_s12   ;;  %s957_s11 = sphi %s1017_s11, %s1398_s11   ;;  %s953_s10 = sphi %s1015_s10, %s1397_s10   ;;  %s949_s9 = sphi %s1013_s9, %s1396_s9  }
   0xe   : > { %s31_s22 = sadd.s32 1, %s981_s17  ;;  %s34_s23 = sadd.s32 1, %s985_s18 }
   0xf   : > { %p32_p0 = scmp.ge.s32.totalorder %s31_s22, 2  ;;  %s43_s24 = sadd.s32 1, %s969_s14 }
  0x10   : > { %p50_p1 = scmp.ne.s32.totalorder %s969_s14, %s965_s13  ;;  %p51_p2 = scmp.eq.s32.totalorder %s989_s19, 0 }
  0x11   : > { %s1407_s22 = smov (%p32_p0, %s31_s22), 0  ;;  %s1409_s23 = smov (!%p32_p0, %s34_s23), %s985_s18 }
  0x12   : > { %s39_s25 = ssub.s32 %s981_s17, %s1407_s22  ;;  %p1079_p3 = por %p51_p2, %p50_p1 }
  0x13   : > { %p36_p4 = scmp.ge.s32.totalorder %s1409_s23, 2  ;;  %p56_p5 = scmp.ne.s32.totalorder %s965_s13, %s961_s12 }
  0x14   : > { %p57_p6 = scmp.eq.s32.totalorder %s671_s20, 0  ;;  %s69_s27 = sadd.s32 1, %s957_s11 }
  0x15   : > { %s1411_s23 = smov (%p36_p4, %s1409_s23), 0  ;;  %p79_p8 = scmp.ne.s32.totalorder %s957_s11, %s953_s10 }
  0x16   : > { %1387 = sst [smem:[#allocation13_spill]] %s1411_s23  ;;  %p1087_p7 = por %p57_p6, %p56_p5 }
  0x17   : > { %s38_s29 = ssub.s32 %s985_s18, %s1411_s23  ;;  %p80_p9 = scmp.eq.s32.totalorder %s671_s20, 3 }
  0x18   : > { %s40_s30 = sor.u32 %s39_s25, %s38_s29  ;;  %p67_p10 = scmp.eq.s32.totalorder %s38_s29, 0 }
  0x19   : > { %p41_p11 = scmp.eq.s32.totalorder %s40_s30, 0  ;;  %p1095_p12 = por %p80_p9, %p79_p8 }
  0x1a   : > { %s1100_s4 = scalar_select %p67_p10, %s957_s11, %s69_s27  }
  0x1b   : > { %s1389_s3 = scalar_select %p1095_p12, 1, 0 }
  0x1c   : > { %s1103_s5 = scalar_select %p41_p11, %s969_s14, %s43_s24  }
  0x1d   : > { %p85_p13 = scmp.ne.s32.totalorder %s953_s10, %s949_s9  ;;  %p86_p0 = scmp.eq.s32.totalorder %s672_s21, 3 }
  0x1e   : > { %p709_p1 = scmp.lt.s32.totalorder %s989_s19, 4  ;;  %s132_s7 = sand.u32 1, %s969_s14  }
  0x1f   : > { %p1108_p2 = por %p86_p0, %p85_p13  ;;  %s675_s8 = sshll.u32 %s132_s7, 7 }
  0x20   : > { %s691_s12 = sshll.u32 %s985_s18, 5  ;;  %s136_s25 = scalar_lea.vmem [#allocation4], %s675_s8 }
  0x21   : > { %s1390_s6 = scalar_select %p1108_p2, 1, 0 }
  0x22   : > { %s142_s20 = sadd.s32 %s981_s17, %s691_s12  ;;  %s145_s29 = sshll.u32 %s136_s25, 4  ;;  %s1115_s29 = int_to_ptr.vmem [resolvable:$true] %s145_s29 }
  0x23   : > { %s678_s30 = sshll.u32 %s142_s20, 7  ;;  %s1391_s0 = sld [smem:[#allocation14_spill]] }
  0x24   : > { %p1124_p4 = pnand %p709_p1, %p1079_p3  ;;  %s1128_s8 = scalar_lea.sflag [#allocation5], %s132_s7 }
  0x26   : > { %p807_p6 = pneg %p1124_p4 }
  0x29   : > { %s1120_s24 = scalar_lea.hbm %s1391_s0, %s678_s30  ;;  %s810_s20 = scalar_lea.hbm %s1391_s0, 8192 }
  0x2a   : > { %s805_s12 = scalar_lea.hbm %s1120_s24, 2048  ;;  %p811_p3 = scmp.lt.u32.totalorder %s1120_s24, %s1391_s0 }
  0x2b   : > { %p806_p5 = scmp.ne.s32.totalorder %s1120_s24, %s805_s12  ;;  %p812_p10 = scmp.lt.u32.totalorder %s810_s20, %s805_s12 }
  0x2c   : > { %p814_p13 = scmp.lt.u32.totalorder %s805_s12, %s1120_s24 }
  0x2d   : > { %p808_p8 = pnand %p807_p6, %p806_p5  ;;  %p813_p11 = por %p812_p10, %p811_p3 }
  0x2f   : > { %p809_p9 = pneg %p808_p8  ;;  %p815_p0 = por %p814_p13, %p813_p11 }
  0x31   : > { %p816_p1 = pnand %p815_p0, %p809_p9 }
  0x33   : > { %819 = shalt.err (!%p816_p1)
}
  0x34   : > { %s820_s7 = scalar_lea.vmem %s1115_s29, 2048  ;;  %s991_s27 = smov [#allocation4]  }
  0x35   : > { %p821_p5 = scmp.ne.s32.totalorder %s1115_s29, %s820_s7  ;;  %s825_s23 = sshll.u32 %s991_s27, 4  ;;  %s826_s23 = int_to_ptr.vmem [resolvable:$false] %s825_s23 }
  0x36   : > { %s827_s26 = scalar_lea.vmem %s826_s23, 4096  ;;  %p828_p12 = scmp.lt.s32.totalorder %s1115_s29, %s826_s23 }
  0x37   : > { %p823_p8 = pnand %p821_p5, %p807_p6  ;;  %p829_p3 = scmp.lt.s32.totalorder %s827_s26, %s820_s7 }
  0x39   : > { %p824_p2 = pneg %p823_p8  ;;  %p830_p10 = por %p829_p3, %p828_p12 }
  0x3b   : > { %p831_p11 = pnand %p830_p10, %p824_p2 }
  0x3d   : > { %834 = shalt.err (!%p831_p11)
}
  0x3e   : > { %s992_s12 = smov 256   ;;  %s993_s20 = smov 128  }
  0x3f   : > { %s994_s25 = smov 8   ;;  %p679_p6 = scmp.ge.s32.totalorder %s989_s19, 1 }
  0x40   : > { %701 = dma.hbm_to_vmem [thread:$0]  (!%p1124_p4), %s1120_s24, 2048, %s1115_s29, %s1128_s8, %s992_s12, %s993_s20, %s994_s25  }
  0x41   : > { %p153_p9 = scmp.lt.s32.totalorder %s989_s19, 5 }
  0x43   : > { %p154_p13 = pnand %p679_p6, %p153_p9 }
  0x44   : > { %s159_s30 = sand.u32 (!%p154_p13), 1, %s965_s13  }
  0x45   : > { %157 = sbr.rel (%p154_p13) target bundleno = 375 (0x177), region = 24  ;;  %s680_s7 = sshll.u32 (!%p154_p13), %s159_s30, 7 }
  0x46   : > { %s160_s27 = scalar_lea.sflag (!%p154_p13), [#allocation5], %s159_s30  ;;  %s1159_s23 = scalar_lea.vmem (!%p154_p13), [#allocation4], %s680_s7 }
  0x4c   : > { %936 = dma.done.wait (%p1087_p7), %s160_s27, 2048  }
  0x4d   : > { %938 = vsyncadd (%p1087_p7), %s160_s27, 4294965248  ;;  %s1166_s26 = sand.u32 1, %s953_s10   ;;  %p683_p12 = scmp.ne.s32.totalorder %s973_s15, 0 }
  0x4e   : > { %s681_s29 = sshll.u32 %s1166_s26, 3  ;;  %vm194_vm0 = vcmask (!%p683_p12), 130048   ;;  %v995_v0 = vmov (!%p683_p12), 0.0  }
  0x4f   : > { %s1169_s24 = scalar_lea.vmem [#allocation7], %s681_s29  ;;  %s1171_s21 = scalar_lea.vmem [#allocation8], %s681_s29  ;;  %195 = vst.msk [vmem:[#allocation2] sm:$0xff] (!%p683_p12), %vm194_vm0, %v995_v0  ;;  %196 = vst.msk [vmem:[#allocation3] sm:$0xff] (!%p683_p12), %vm194_vm0, %v995_v0 }
  0x50   : > { %193 = sbr.rel (%p683_p12) target bundleno = 87 (0x57), region = 32 }
  0x57 PF: > { %v199_v1 = vld [vmem:[%s1159_s23 + $0x10] sm:$0xff]  ;;  %v197_v2 = vld [vmem:[%s1159_s23] sm:$0xff]  ;;  %v200_v3 = vld [vmem:[%s1159_s23 + $0x18] sm:$0xff]  ;;  %v262_v49 = vlaneseq  ;;  %vm273_vm1 = vcmask 130112   ;;  %vm338_vm2 = vcmask 1041409   ;;  %vm340_vm3 = vcmask 1042434  }
  0x58   : > { %218 = vadd.xlane.f32.xlu1 %v199_v1  ;;  %214 = vadd.xlane.f32.xlu0 %v197_v2  ;;  %v198_v4 = vld [vmem:[%s1159_s23 + $0x8] sm:$0xff]  ;;  %v357_v6 = vmul.f32 %v197_v2, %v197_v2  ;;  %v360_v7 = vmul.f32 %v200_v3, %v200_v3  ;;  %v359_v8 = vmul.f32 %v199_v1, %v199_v1  ;;  %v201_v10 = vld [vmem:[%s1159_s23 + $0x20] sm:$0xff]  ;;  %v204_v13 = vld [vmem:[%s1159_s23 + $0x38] sm:$0xff]  ;;  %vm342_vm4 = vcmask 1043459   ;;  %p684_p7 = scmp.ne.s32.totalorder %s973_s15, 1 }
  0x59   : > { %v358_v5 = vmul.f32 %v198_v4, %v198_v4  ;;  %v202_v9 = vld [vmem:[%s1159_s23 + $0x28] sm:$0xff]  ;;  %v361_v12 = vmul.f32 %v201_v10, %v201_v10  ;;  %v203_v14 = vld [vmem:[%s1159_s23 + $0x30] sm:$0xff]  ;;  %v364_v15 = vmul.f32 %v204_v13, %v204_v13  ;;  %v205_v18 = vld [vmem:[%s1159_s23 + $0x40] sm:$0xff]  ;;  %v263_v52 = vand.u32 127, %v262_v49 }
  0x5a   : > { %v362_v11 = vmul.f32 %v202_v9, %v202_v9  ;;  %v363_v16 = vmul.f32 %v203_v14, %v203_v14  ;;  %v206_v17 = vld [vmem:[%s1159_s23 + $0x48] sm:$0xff]  ;;  %v365_v20 = vmul.f32 %v205_v18, %v205_v18  ;;  %v208_v21 = vld [vmem:[%s1159_s23 + $0x58] sm:$0xff]  ;;  %v207_v22 = vld [vmem:[%s1159_s23 + $0x50] sm:$0xff]  ;;  %v265_v56 = vshrl.u32 %v262_v49, 7 }
  0x5b   : > { %v366_v19 = vmul.f32 %v206_v17, %v206_v17  ;;  %v368_v23 = vmul.f32 %v208_v21, %v208_v21  ;;  %v367_v24 = vmul.f32 %v207_v22, %v207_v22  ;;  %v210_v25 = vld [vmem:[%s1159_s23 + $0x68] sm:$0xff]  ;;  %v209_v26 = vld [vmem:[%s1159_s23 + $0x60] sm:$0xff]  ;;  %v212_v29 = vld [vmem:[%s1159_s23 + $0x78] sm:$0xff]  ;;  %v268_v53 = vadd.s32 4294967288, %v263_v52 }
  0x5c   : > { %220 = vadd.xlane.f32.xlu1 %v200_v3  ;;  %216 = vadd.xlane.f32.xlu0 %v198_v4  ;;  %v370_v27 = vmul.f32 %v210_v25, %v210_v25  ;;  %v369_v28 = vmul.f32 %v209_v26, %v209_v26  ;;  %v211_v30 = vld [vmem:[%s1159_s23 + $0x70] sm:$0xff]  ;;  %v372_v31 = vmul.f32 %v212_v29, %v212_v29  ;;  %vm344_vm5 = vcmask 1044484  }
  0x5d   : > { %v371_v32 = vmul.f32 %v211_v30, %v211_v30  ;;  %v1204_v57 = vsub.s32 %v268_v53, %v265_v56  ;;  %v1206_v60 = vsub.s32 %v263_v52, %v265_v56  ;;  %vm346_vm6 = vcmask 1045509   ;;  %v213_v53 = vld [vmem:[#allocation2] sm:$0xff] }
  0x5e   : > { %vm348_vm7 = vcmask 1046534   ;;  %vm350_vm8 = vcmask 1047559   ;;  %vm354_vm9 = vcmask 130048  }
  0x60   : > { %375 = vadd.xlane.f32.xlu1 %v358_v5  ;;  %373 = vadd.xlane.f32.xlu0 %v357_v6 }
  0x64   : > { %379 = vadd.xlane.f32.xlu1 %v360_v7  ;;  %377 = vadd.xlane.f32.xlu0 %v359_v8 }
  0x68   : > { %224 = vadd.xlane.f32.xlu1 %v202_v9  ;;  %222 = vadd.xlane.f32.xlu0 %v201_v10 }
  0x6c   : > { %383 = vadd.xlane.f32.xlu1 %v362_v11  ;;  %381 = vadd.xlane.f32.xlu0 %v361_v12 }
  0x70   : > { %228 = vadd.xlane.f32.xlu1 %v204_v13  ;;  %226 = vadd.xlane.f32.xlu0 %v203_v14 }
  0x74   : > { %387 = vadd.xlane.f32.xlu1 %v364_v15  ;;  %385 = vadd.xlane.f32.xlu0 %v363_v16 }
  0x78   : > { %232 = vadd.xlane.f32.xlu1 %v206_v17  ;;  %230 = vadd.xlane.f32.xlu0 %v205_v18 }
  0x7c   : > { %391 = vadd.xlane.f32.xlu1 %v366_v19  ;;  %389 = vadd.xlane.f32.xlu0 %v365_v20 }
  0x80   : > { %236 = vadd.xlane.f32.xlu1 %v208_v21  ;;  %234 = vadd.xlane.f32.xlu0 %v207_v22 }
  0x84   : > { %395 = vadd.xlane.f32.xlu1 %v368_v23  ;;  %393 = vadd.xlane.f32.xlu0 %v367_v24 }
  0x88   : > { %240 = vadd.xlane.f32.xlu1 %v210_v25  ;;  %238 = vadd.xlane.f32.xlu0 %v209_v26 }
  0x8c   : > { %399 = vadd.xlane.f32.xlu1 %v370_v27  ;;  %397 = vadd.xlane.f32.xlu0 %v369_v28 }
  0x90   : > { %244 = vadd.xlane.f32.xlu1 %v212_v29  ;;  %242 = vadd.xlane.f32.xlu0 %v211_v30 }
  0x94   : > { %403 = vadd.xlane.f32.xlu1 %v372_v31  ;;  %401 = vadd.xlane.f32.xlu0 %v371_v32 }
  0xe5   : > { %v219_v33 = vpop.xlane.xlu1 %218  ;;  %v215_v34 = vpop.xlane.xlu0 %214 }
  0xe6   : > { %v278_v1 = vrot.slane %v219_v33, %v1206_v60  ;;  %v267_v2 = vrot.slane %v215_v34, %v1206_v60 }
  0xe9   : > { %v221_v35 = vpop.xlane.xlu1 %220  ;;  %v217_v36 = vpop.xlane.xlu0 %216 }
  0xea   : > { %v282_v61 = vrot.slane %v221_v35, %v1204_v57  ;;  %v272_v62 = vrot.slane %v217_v36, %v1204_v57 }
  0xec   : > { %v283_v5 = vsel %vm273_vm1, %v282_v61, %v278_v1  ;;  %v274_v6 = vsel %vm273_vm1, %v272_v62, %v267_v2 }
  0xed   : > { %v376_v37 = vpop.xlane.xlu1 %375  ;;  %v374_v38 = vpop.xlane.xlu0 %373  ;;  %v339_v22 = vsel %vm338_vm2, %v283_v5, %v274_v6  ;;  %v356_v6 = vld [vmem:[#allocation3] sm:$0xff] }
  0xee   : > { %v428_v7 = vrot.slane %v376_v37, %v1204_v57  ;;  %v424_v8 = vrot.slane %v374_v38, %v1206_v60 }
  0xf0   : > { %v429_v23 = vsel %vm273_vm1, %v428_v7, %v424_v8 }
  0xf1   : > { %v1190_v39 = vpop.xlane.xlu1 %379  ;;  %v378_v40 = vpop.xlane.xlu0 %377 }
  0xf2   : > { %v437_v11 = vrot.slane %v1190_v39, %v1204_v57  ;;  %v433_v12 = vrot.slane %v378_v40, %v1206_v60 }
  0xf4   : > { %v438_v28 = vsel %vm273_vm1, %v437_v11, %v433_v12 }
  0xf5   : > { %v225_v41 = vpop.xlane.xlu1 %224  ;;  %v223_v42 = vpop.xlane.xlu0 %222 }
  0xf6   : > { %v291_v3 = vrot.slane %v225_v41, %v1204_v57  ;;  %v287_v4 = vrot.slane %v223_v42, %v1206_v60 }
  0xf8   : > { %v292_v15 = vsel %vm273_vm1, %v291_v3, %v287_v4 }
  0xf9   : > { %v1192_v43 = vpop.xlane.xlu1 %383  ;;  %v1194_v44 = vpop.xlane.xlu0 %381  ;;  %v341_v32 = vsel %vm340_vm3, %v292_v15, %v339_v22 }
  0xfa   : > { %v446_v18 = vrot.slane %v1192_v43, %v1204_v57  ;;  %v442_v19 = vrot.slane %v1194_v44, %v1206_v60 }
  0xfc   : > { %v447_v36 = vsel %vm273_vm1, %v446_v18, %v442_v19 }
  0xfd   : > { %v229_v45 = vpop.xlane.xlu1 %228  ;;  %v227_v46 = vpop.xlane.xlu0 %226 }
  0xfe   : > { %v300_v13 = vrot.slane %v229_v45, %v1204_v57  ;;  %v296_v14 = vrot.slane %v227_v46, %v1206_v60 }
 0x100   : > { %v301_v29 = vsel %vm273_vm1, %v300_v13, %v296_v14 }
 0x101   : > { %v1196_v47 = vpop.xlane.xlu1 %387  ;;  %v1198_v48 = vpop.xlane.xlu0 %385  ;;  %v343_v40 = vsel %vm342_vm4, %v301_v29, %v341_v32 }
 0x102   : > { %v455_v30 = vrot.slane %v1196_v47, %v1204_v57  ;;  %v451_v31 = vrot.slane %v1198_v48, %v1206_v60 }
 0x104   : > { %v456_v46 = vsel %vm273_vm1, %v455_v30, %v451_v31 }
 0x105   : > { %v233_v50 = vpop.xlane.xlu1 %232  ;;  %v231_v51 = vpop.xlane.xlu0 %230 }
 0x106   : > { %v309_v16 = vrot.slane %v233_v50, %v1204_v57  ;;  %v305_v17 = vrot.slane %v231_v51, %v1206_v60  ;;  %v493_v50 = vsel %vm338_vm2, %v438_v28, %v429_v23 }
 0x108   : > { %v310_v33 = vsel %vm273_vm1, %v309_v16, %v305_v17 }
 0x109   : > { %v1200_v54 = vpop.xlane.xlu1 %391  ;;  %v1202_v55 = vpop.xlane.xlu0 %389  ;;  %v345_v47 = vsel %vm344_vm5, %v310_v33, %v343_v40 }
 0x10a   : > { %v464_v34 = vrot.slane %v1200_v54, %v1204_v57  ;;  %v460_v35 = vrot.slane %v1202_v55, %v1206_v60  ;;  %v494_v54 = vsel %vm340_vm3, %v447_v36, %v493_v50 }
 0x10c   : > { %v465_v51 = vsel %vm273_vm1, %v464_v34, %v460_v35 }
 0x10d   : > { %v237_v58 = vpop.xlane.xlu1 %236  ;;  %v235_v59 = vpop.xlane.xlu0 %234 }
 0x10e   : > { %v318_v20 = vrot.slane %v237_v58, %v1204_v57  ;;  %v314_v21 = vrot.slane %v235_v59, %v1206_v60  ;;  %v495_v59 = vsel %vm342_vm4, %v456_v46, %v494_v54 }
 0x10f   : > { %v496_v1 = vsel %vm344_vm5, %v465_v51, %v495_v59 }
 0x110   : > { %v319_v37 = vsel %vm273_vm1, %v318_v20, %v314_v21 }
 0x111   : > { %v1210_v63 = vpop.xlane.xlu1 %395  ;;  %v1212_v0 = vpop.xlane.xlu0 %393  ;;  %v347_v52 = vsel %vm346_vm6, %v319_v37, %v345_v47 }
 0x112   : > { %v473_v38 = vrot.slane %v1210_v63, %v1204_v57  ;;  %v469_v39 = vrot.slane %v1212_v0, %v1206_v60 }
 0x114   : > { %v474_v55 = vsel %vm273_vm1, %v473_v38, %v469_v39 }
 0x115   : > { %v241_v9 = vpop.xlane.xlu1 %240  ;;  %v239_v10 = vpop.xlane.xlu0 %238  ;;  %v497_v5 = vsel %vm346_vm6, %v474_v55, %v496_v1 }
 0x116   : > { %v327_v24 = vrot.slane %v241_v9, %v1204_v57  ;;  %v323_v25 = vrot.slane %v239_v10, %v1206_v60 }
 0x118   : > { %v328_v41 = vsel %vm273_vm1, %v327_v24, %v323_v25 }
 0x119   : > { %v400_v26 = vpop.xlane.xlu1 %399  ;;  %v398_v27 = vpop.xlane.xlu0 %397  ;;  %v349_v56 = vsel %vm348_vm7, %v328_v41, %v347_v52 }
 0x11a   : > { %v482_v42 = vrot.slane %v400_v26, %v1204_v57  ;;  %v478_v43 = vrot.slane %v398_v27, %v1206_v60 }
 0x11c   : > { %v483_v61 = vsel %vm273_vm1, %v482_v42, %v478_v43 }
 0x11d   : > { %v245_v44 = vpop.xlane.xlu1 %244  ;;  %v243_v45 = vpop.xlane.xlu0 %242  ;;  %v498_v7 = vsel %vm348_vm7, %v483_v61, %v497_v5 }
 0x11e   : > { %v336_v48 = vrot.slane %v245_v44, %v1204_v57  ;;  %v332_v49 = vrot.slane %v243_v45, %v1206_v60 }
 0x120   : > { %v337_v58 = vsel %vm273_vm1, %v336_v48, %v332_v49 }
 0x121   : > { %v351_v62 = vsel %vm350_vm8, %v337_v58, %v349_v56  ;;  %v404_v63 = vpop.xlane.xlu1 %403  ;;  %v402_v0 = vpop.xlane.xlu0 %401 }
 0x122   : > { %v353_v2 = vadd.f32 %v351_v62, %v213_v53  ;;  %v491_v3 = vrot.slane %v404_v63, %v1204_v57  ;;  %v487_v4 = vrot.slane %v402_v0, %v1206_v60  ;;  %506 = sbr.rel (%p684_p7) target bundleno = 326 (0x146), region = 36 }
 0x124   : > { %355 = vst.msk [vmem:[#allocation2] sm:$0xff] %vm354_vm9, %v353_v2  ;;  %v492_v8 = vsel %vm273_vm1, %v491_v3, %v487_v4 }
 0x125   : > { %v499_v9 = vsel %vm350_vm8, %v492_v8, %v498_v7 }
 0x126   : > { %v501_v10 = vadd.f32 %v499_v9, %v356_v6 }
 0x128   : > { %502 = vst.msk [vmem:[#allocation3] sm:$0xff] %vm354_vm9, %v501_v10 }
 0x12b   : > { %v507_v57 = vld [vmem:[#allocation2] sm:$0xff] }
 0x12c   : > { %v508_v60 = vmul.f32 0.00390625, %v507_v57 }
 0x12e   : > { %v510_v12 = vmul.f32 %v508_v60, %v507_v57  ;;  %515 = vst.msk [vmem:[%s1169_s24] sm:$0xff] %vm354_vm9, %v508_v60 }
 0x12f   : > { %v509_v11 = vld [vmem:[#allocation3] sm:$0xff] }
 0x130   : > { %v511_v13 = vsub.f32 %v509_v11, %v510_v12 }
 0x132   : > { %v513_v14 = vmul.f32 0.003921569, %v511_v13 }
 0x134   : > { %v514_v15 = vmax.f32 %v513_v14, 0.0 }
 0x136   : > { %803 = vrsqrt.f32 %v514_v15  ;;  %vm518_vm10 = vcmp.eq.f32.partialorder %v514_v15, inf  ;;  %v521_v17 = vand.u32 2147483648, %v514_v15  ;;  %vm520_vm11 = vcmp.eq.f32.partialorder %v514_v15, 0.0 }
 0x140   : > { %v804_v16 = vpop.eup %803 }
 0x141   : > { %v517_v18 = vmul.f32 %v804_v16, %v514_v15 }
 0x143   : > { %v519_v19 = vsel %vm518_vm10, %v514_v15, %v517_v18 }
 0x144   : > { %v522_v20 = vsel %vm520_vm11, %v521_v17, %v519_v19 }
 0x145   : > { %523 = vst.msk [vmem:[%s1171_s21] sm:$0xff] %vm354_vm9, %v522_v20 }
 0x146 PF: > { %s687_s15 = sshll.u32 %s977_s16, 7  ;;  %s543_s20 = sshll.u32 %s1169_s24, 4  ;;  %s544_s20 = int_to_ptr.vmem [resolvable:$true] %s543_s20 }
 0x147   : > { %s1296_s12 = scalar_lea.hbm %s1381_s1, %s687_s15  ;;  %s525_s25 = scalar_lea.sflag [#allocation6], %s1166_s26 }
 0x148   : > { %s835_s30 = scalar_lea.vmem %s544_s20, 128  ;;  %p1393_p4 = scmp.ne.s32.totalorder %s1389_s3, 0 }
 0x149   : > { %p836_p2 = scmp.ne.s32.totalorder %s544_s20, %s835_s30  ;;  %s996_s7 = smov [#allocation7]  }
 0x14a   : > { %s839_s27 = sshll.u32 %s996_s7, 4  ;;  %s840_s27 = int_to_ptr.vmem [resolvable:$false] %s839_s27 }
 0x14b   : > { %p837_p0 = pnand %p836_p2, %p1393_p4  ;;  %s841_s23 = scalar_lea.vmem %s840_s27, 256 }
 0x14c   : > { %p842_p5 = scmp.lt.s32.totalorder %s544_s20, %s840_s27  ;;  %p843_p8 = scmp.lt.s32.totalorder %s841_s23, %s835_s30 }
 0x14d   : > { %p838_p1 = pneg %p837_p0 }
 0x14e   : > { %p844_p3 = por %p843_p8, %p842_p5 }
 0x150   : > { %p845_p10 = pnand %p844_p3, %p838_p1 }
 0x152   : > { %848 = shalt.err (!%p845_p10)
}
 0x153   : > { %s849_s29 = scalar_lea.hbm %s1296_s12, 128  ;;  %s853_s8 = scalar_lea.hbm %s1381_s1, 256 }
 0x154   : > { %p850_p11 = scmp.ne.s32.totalorder %s1296_s12, %s849_s29  ;;  %p854_p13 = scmp.lt.u32.totalorder %s1296_s12, %s1381_s1 }
 0x155   : > { %p855_p12 = scmp.lt.u32.totalorder %s853_s8, %s849_s29  ;;  %p857_p2 = scmp.lt.u32.totalorder %s849_s29, %s1296_s12 }
 0x156   : > { %p851_p6 = pnand %p850_p11, %p1393_p4 }
 0x157   : > { %p856_p7 = por %p855_p12, %p854_p13 }
 0x158   : > { %p852_p9 = pneg %p851_p6 }
 0x159   : > { %p858_p0 = por %p857_p2, %p856_p7 }
 0x15b   : > { %p859_p1 = pnand %p858_p0, %p852_p9 }
 0x15d   : > { %862 = shalt.err (!%p859_p1)
}
 0x15e   : > { %694 = dma.vmem_to_hbm [thread:$0]  (%p1393_p4), %s544_s20, 128, %s1296_s12, %s525_s25  }
 0x15f   : > { %s1322_s24 = scalar_lea.hbm %s1382_s2, %s687_s15  ;;  %s556_s28 = sshll.u32 %s1171_s21, 4  ;;  %s557_s28 = int_to_ptr.vmem [resolvable:$true] %s556_s28 }
 0x160   : > { %s530_s29 = scalar_lea.sflag [#allocation9], %s1166_s26  ;;  %s863_s8 = scalar_lea.vmem %s557_s28, 128 }
 0x161   : > { %p864_p5 = scmp.ne.s32.totalorder %s557_s28, %s863_s8  ;;  %s997_s7 = smov [#allocation8]  }
 0x162   : > { %s867_s27 = sshll.u32 %s997_s7, 4  ;;  %s868_s27 = int_to_ptr.vmem [resolvable:$false] %s867_s27 }
 0x163   : > { %p865_p8 = pnand %p864_p5, %p1393_p4  ;;  %s869_s0 = scalar_lea.vmem %s868_s27, 256 }
 0x164   : > { %p870_p10 = scmp.lt.s32.totalorder %s557_s28, %s868_s27  ;;  %p871_p11 = scmp.lt.s32.totalorder %s869_s0, %s863_s8 }
 0x165   : > { %p866_p3 = pneg %p865_p8 }
 0x166   : > { %p872_p6 = por %p871_p11, %p870_p10 }
 0x168   : > { %p873_p9 = pnand %p872_p6, %p866_p3 }
 0x16a   : > { %876 = shalt.err (!%p873_p9)
}
 0x16b   : > { %s877_s16 = scalar_lea.hbm %s1322_s24, 128  ;;  %s881_s15 = scalar_lea.hbm %s1382_s2, 256 }
 0x16c   : > { %p878_p13 = scmp.ne.s32.totalorder %s1322_s24, %s877_s16  ;;  %p882_p2 = scmp.lt.u32.totalorder %s1322_s24, %s1382_s2 }
 0x16d   : > { %p883_p0 = scmp.lt.u32.totalorder %s881_s15, %s877_s16  ;;  %p885_p5 = scmp.lt.u32.totalorder %s877_s16, %s1322_s24 }
 0x16e   : > { %p879_p12 = pnand %p878_p13, %p1393_p4 }
 0x16f   : > { %p884_p1 = por %p883_p0, %p882_p2 }
 0x170   : > { %p880_p7 = pneg %p879_p12 }
 0x171   : > { %p886_p8 = por %p885_p5, %p884_p1 }
 0x173   : > { %p887_p3 = pnand %p886_p8, %p880_p7 }
 0x175   : > { %890 = shalt.err (!%p887_p3)
}
 0x176   : > { %695 = dma.vmem_to_hbm [thread:$0]  (%p1393_p4), %s557_s28, 128, %s1322_s24, %s530_s29  }
 0x177 PF: > { %p710_p10 = scmp.ge.s32.totalorder %s989_s19, 2  ;;  %s568_s0 = sand.u32 1, %s949_s9  }
 0x178   : > { %p1394_p11 = scmp.ne.s32.totalorder %s1390_s6, 0  ;;  %s569_s25 = scalar_lea.sflag [#allocation6], %s568_s0 }
 0x17a   : > { %p703_p6 = pnand %p710_p10, %p1394_p11 }
 0x17c   : > { %940 = dma.done.wait (!%p703_p6), %s569_s25, 128  }
 0x17d   : > { %942 = vsyncadd (!%p703_p6), %s569_s25, 4294967168  ;;  %s578_s30 = scalar_lea.sflag [#allocation9], %s568_s0 }
 0x17e   : > { %944 = dma.done.wait (!%p703_p6), %s578_s30, 128  }
 0x17f   : > { %946 = vsyncadd (!%p703_p6), %s578_s30, 4294967168  ;;  %s22_s19 = sadd.s32 1, %s989_s19   ;;  %s1395_s3 = sld [smem:[#allocation13_spill]] }
 0x180   : > { %p19_p9 = scmp.ge.s32.totalorder %s22_s19, 6   ;;  %s1396_s9 = smov %s953_s10 }
 0x181   : > { %s1397_s10 = smov %s957_s11  ;;  %s1398_s11 = smov %s1100_s4 }
 0x182   : > { %s1399_s12 = smov %s965_s13  ;;  %s1400_s13 = smov %s969_s14 }
 0x183   : > { %s1401_s14 = smov %s1103_s5  ;;  %s1402_s15 = smov %s981_s17 }
 0x184   : > { %s1403_s16 = smov %s985_s18  ;;  %s1404_s17 = smov %s1407_s22 }
 0x185   : > { %s1405_s18 = smov %s1395_s3  ;;  %21 = sbr.rel (!%p19_p9) target bundleno = 13 (0xd), region = 94 }
 0x18c   :  { %583 = vsyncpa [#allocation5], 1 }
 0x18d   :  { %585 = vsyncpa [#allocation5 + $0x1], 1 }
 0x18e   :  { %586 = vsyncpa [#allocation6], 1 }
 0x18f   :  { %588 = vsyncpa [#allocation6 + $0x1], 1 }
 0x190   :  { %589 = vsyncpa [#allocation9], 1 }
 0x191   :  { %591 = vsyncpa [#allocation9 + $0x1], 1 }

</bundles_post_ra>
